<compile_context>
chip_gen: v7x
topology: tpu7x:2x2x1
jax: 0.10.0
libtpu: 0.0.40
codegen_flags: <defaults>
</compile_context>

<pallas_src>
import functools

import jax
import jax.numpy as jnp
from jax.experimental import pallas as pl
from jax.experimental.pallas import tpu as pltpu


def _round_up(n, m):
    return ((n + m - 1) // m) * m


def _choose_tile_b(B, D, itemsize):
    """Pick the batch tile: one tile for small batches, big tiles for large."""
    b8 = _round_up(max(B, 1), 8)
    # Whole batch fits comfortably in one tile (<= ~2 MiB of x): single grid
    # step, no per-step pipeline overhead, no extra partials.
    if b8 * D * itemsize <= (2 << 20):
        return b8
    # Large-batch path: ~1 MiB+ tiles reach ~85% of HBM roofline. Keep the
    # double-buffered x tile under ~8 MiB so it fits every generation
    # (v5e 16 MiB scoped default, v7x 64 MiB physical / 32 MiB scoped default).
    max_rows_by_vmem = (8 << 20) // (2 * D * itemsize)
    tile_b = min(1024, max_rows_by_vmem, b8)
    return max(8, (tile_b // 8) * 8)


def _center_loss_kernel(x_ref, c_ref, lab_ref, out_ref, *, batch_size):
    # x_ref:   (TB, D)  features for this batch tile
    # c_ref:   (C, D)   full (small) centers table
    # lab_ref: (TB, 1)  int32 labels
    # out_ref: (1, 1)   SMEM accumulator (resident across the serial grid)
    i = pl.program_id(0)
    num_classes = c_ref.shape[0]

    @pl.when(i == 0)
    def _():
        # Constant from the masked-out (zero) entries torch clamps to 1e-12:
        # (C-1)*1e-12 per row, pre-multiplied by B so the final /B is exact.
        out_ref[0, 0] = jnp.float32(batch_size * (num_classes - 1) * 1e-12)

    x = x_ref[...].astype(jnp.float32)            # (TB, D)
    lab = lab_ref[...]                            # (TB, 1) int32
    tb = x.shape[0]

    # Gather each row's own center with VPU selects (C is tiny) — no MXU.
    gathered = jnp.zeros_like(x)
    for k in range(num_classes):
        row = c_ref[pl.ds(k, 1), :].astype(jnp.float32)     # (1, D) sublane-bcast
        gathered = jnp.where(lab == k, row, gathered)       # (TB, D)

    # Mask tail rows of the last tile BEFORE squaring: out-of-bounds block
    # contents are unspecified (possibly NaN), and NaN*0 would still be NaN.
    row_ids = i * tb + jax.lax.broadcasted_iota(jnp.int32, (tb, 1), 0)
    valid = row_ids < batch_size                             # (TB, 1) bool
    diff = jnp.where(valid, x - gathered, 0.0)               # (TB, D)

    d = jnp.sum(diff * diff, axis=1, keepdims=True)          # (TB, 1)
    d = jnp.clip(d, 1e-12, 1e12)        # matches torch clamp(1e-12, 1e12)
    d = jnp.where(valid, d, 0.0)        # padded rows contribute nothing

    out_ref[0, 0] += jnp.sum(d)

    @pl.when(i == pl.num_programs(0) - 1)
    def _():
        out_ref[0, 0] = out_ref[0, 0] / batch_size


def center_loss(x, centers, labels, *, tile_b=None):
    """x: (B, D) float, centers: (C, D) float, labels: (B,) int -> scalar f32.

    x / centers may be bf16 (kernel upcasts to f32 for the math), halving the
    dominant HBM stream when the model runs in bf16.
    """
    B, D = x.shape
    C, Dc = centers.shape
    assert D == Dc, (D, Dc)

    labels_2d = labels.astype(jnp.int32).reshape(B, 1)

    itemsize = jnp.dtype(x.dtype).itemsize
    if tile_b is None:
        tile_b = _choose_tile_b(B, D, itemsize)
    assert tile_b % 8 == 0
    num_tiles = pl.cdiv(B, tile_b)

    # VMEM budget: double-buffered x tile + centers + labels, with headroom,
    # capped at 32 MiB so it stays within every generation's scoped ceiling.
    need = 2 * tile_b * D * itemsize + 2 * C * D * 4 + 2 * tile_b * 4
    vmem_limit = int(min(32 << 20, max(16 << 20, 2 * need)))

    out = pl.pallas_call(
        functools.partial(_center_loss_kernel, batch_size=B),
        out_shape=jax.ShapeDtypeStruct((1, 1), jnp.float32),
        grid=(num_tiles,),
        in_specs=[
            pl.BlockSpec((tile_b, D), lambda i: (i, 0)),   # x tile
            pl.BlockSpec((C, D), lambda i: (0, 0)),        # full (tiny) centers
            pl.BlockSpec((tile_b, 1), lambda i: (i, 0)),   # labels tile
        ],
        # Single scalar accumulator, resident across the (serial) grid.
        out_specs=pl.BlockSpec((1, 1), lambda i: (0, 0), memory_space=pltpu.SMEM),
        compiler_params=pltpu.CompilerParams(
            dimension_semantics=("arbitrary",),
            vmem_limit_bytes=vmem_limit),
    )(x, centers, labels_2d)

    return out[0, 0]


def _center_loss_ref(x, centers, labels):
    """Pure-JAX mirror of the PyTorch forward (mask then clamp)."""
    B, _ = x.shape
    C, _ = centers.shape
    distmat = (
        jnp.sum(x**2, axis=1, keepdims=True)
        + jnp.sum(centers**2, axis=1)[None, :]
        - 2.0 * x @ centers.T
    )
    mask = (labels[:, None] == jnp.arange(C)[None, :]).astype(jnp.float32)
    dist = jnp.clip(distmat * mask, 1e-12, 1e12)
    return jnp.sum(dist) / B


if __name__ == "__main__":
    num_classes = 2
    feat_dim = 512
    batch_size = 32

    key = jax.random.PRNGKey(0)
    k_x, k_c, k_l = jax.random.split(key, 3)

    x = jax.random.normal(k_x, (batch_size, feat_dim), dtype=jnp.float32)
    centers = jax.random.normal(k_c, (num_classes, feat_dim), dtype=jnp.float32)
    labels = jax.random.randint(k_l, (batch_size,), 0, num_classes, dtype=jnp.int32)

    loss = center_loss(x, centers, labels)
    jax.block_until_ready(loss)

    ref = _center_loss_ref(x, centers, labels)
    assert jnp.allclose(loss, ref, rtol=1e-5, atol=1e-5), (loss, ref)

    # Also exercise the non-divisible / multi-tile path (tail-row masking).
    x2 = jax.random.normal(k_x, (37, feat_dim), dtype=jnp.float32)
    labels2 = jax.random.randint(k_l, (37,), 0, num_classes, dtype=jnp.int32)
    loss2 = center_loss(x2, centers, labels2, tile_b=16)
    jax.block_until_ready(loss2)
    ref2 = _center_loss_ref(x2, centers, labels2)
    assert jnp.allclose(loss2, ref2, rtol=1e-5, atol=1e-5), (loss2, ref2)

    print("KERNEL_OK")
</pallas_src>

<mosaic_0001>
module attributes {stable_mosaic.version = 11 : i64} {
  func.func @_center_loss_kernel(%arg0: i32, %arg1: memref<32x512xf32, #tpu.memory_space<vmem>>, %arg2: memref<2x512xf32, #tpu.memory_space<vmem>>, %arg3: memref<32x1xi32, #tpu.memory_space<vmem>>, %arg4: memref<1x1xf32, #tpu.memory_space<smem>>) attributes {dimension_semantics = [#tpu.dimension_semantics<arbitrary>], iteration_bounds = array<i64: 1>, scalar_prefetch = 0 : i64, scratch_operands = 0 : i64, tpu.core_type = #tpu.core_type<tc>, window_params = [{transform_indices = @transform_0, window_bounds = array<i64: 32, 512>}, {pipeline_mode = #tpu.pipeline_mode<synchronous>, transform_indices = @transform_1, window_bounds = array<i64: 2, 512>}, {transform_indices = @transform_2, window_bounds = array<i64: 32, 1>}, {transform_indices = @transform_3, window_bounds = array<i64: 1, 1>}]} {
    %c0_i32 = arith.constant 0 : i32
    %0 = arith.cmpi eq, %arg0, %c0_i32 : i32
    %1 = arith.extui %0 : i1 to i32
    %c0_i32_0 = arith.constant 0 : i32
    %2 = arith.cmpi ne, %1, %c0_i32_0 : i32
    scf.if %2 {
      %cst_21 = arith.constant 3.200000e-11 : f32
      %c0_22 = arith.constant 0 : index
      %c0_23 = arith.constant 0 : index
      %52 = memref.load %arg4[%c0_22, %c0_23] : memref<1x1xf32, #tpu.memory_space<smem>>
      memref.store %cst_21, %arg4[%c0_22, %c0_23] : memref<1x1xf32, #tpu.memory_space<smem>>
    } else {
    }
    %c0 = arith.constant 0 : index
    %c0_1 = arith.constant 0 : index
    %3 = vector.load %arg1[%c0, %c0_1] : memref<32x512xf32, #tpu.memory_space<vmem>>, vector<32x512xf32>
    %c0_2 = arith.constant 0 : index
    %c0_3 = arith.constant 0 : index
    %4 = vector.load %arg3[%c0_2, %c0_3] : memref<32x1xi32, #tpu.memory_space<vmem>>, vector<32x1xi32>
    %cst = arith.constant 0.000000e+00 : f32
    %5 = vector.broadcast %cst : f32 to vector<32x512xf32>
    %c0_4 = arith.constant 0 : index
    %c0_5 = arith.constant 0 : index
    %6 = vector.load %arg2[%c0_4, %c0_5] : memref<2x512xf32, #tpu.memory_space<vmem>>, vector<1x512xf32>
    %c0_i32_6 = arith.constant 0 : i32
    %7 = vector.broadcast %c0_i32_6 : i32 to vector<32x1xi32>
    %8 = arith.cmpi eq, %4, %7 : vector<32x1xi32>
    %9 = vector.shape_cast %8 : vector<32x1xi1> to vector<32x1xi1>
    %10 = vector.broadcast %9 : vector<32x1xi1> to vector<32x512xi1>
    %11 = vector.shape_cast %6 : vector<1x512xf32> to vector<1x512xf32>
    %12 = vector.broadcast %11 : vector<1x512xf32> to vector<32x512xf32>
    %13 = arith.select %10, %12, %5 : vector<32x512xi1>, vector<32x512xf32>
    %c1 = arith.constant 1 : index
    %c0_7 = arith.constant 0 : index
    %14 = vector.load %arg2[%c1, %c0_7] : memref<2x512xf32, #tpu.memory_space<vmem>>, vector<1x512xf32>
    %c1_i32 = arith.constant 1 : i32
    %15 = vector.broadcast %c1_i32 : i32 to vector<32x1xi32>
    %16 = arith.cmpi eq, %4, %15 : vector<32x1xi32>
    %17 = vector.shape_cast %16 : vector<32x1xi1> to vector<32x1xi1>
    %18 = vector.broadcast %17 : vector<32x1xi1> to vector<32x512xi1>
    %19 = vector.shape_cast %14 : vector<1x512xf32> to vector<1x512xf32>
    %20 = vector.broadcast %19 : vector<1x512xf32> to vector<32x512xf32>
    %21 = arith.select %18, %20, %13 : vector<32x512xi1>, vector<32x512xf32>
    %c32_i32 = arith.constant 32 : i32
    %22 = arith.muli %arg0, %c32_i32 : i32
    %23 = tpu.iota {dimensions = array<i32: 0>} : vector<32x1xi32>
    %24 = vector.broadcast %22 : i32 to vector<32x1xi32>
    %25 = arith.addi %24, %23 : vector<32x1xi32>
    %c32_i32_8 = arith.constant 32 : i32
    %26 = vector.broadcast %c32_i32_8 : i32 to vector<32x1xi32>
    %27 = arith.cmpi slt, %25, %26 : vector<32x1xi32>
    %28 = arith.subf %3, %21 : vector<32x512xf32>
    %cst_9 = arith.constant 0.000000e+00 : f32
    %29 = vector.shape_cast %27 : vector<32x1xi1> to vector<32x1xi1>
    %30 = vector.broadcast %29 : vector<32x1xi1> to vector<32x512xi1>
    %31 = vector.broadcast %cst_9 : f32 to vector<32x512xf32>
    %32 = arith.select %30, %28, %31 : vector<32x512xi1>, vector<32x512xf32>
    %33 = arith.mulf %32, %32 : vector<32x512xf32>
    %cst_10 = arith.constant dense<0.000000e+00> : vector<32xf32>
    %34 = vector.multi_reduction <add>, %33, %cst_10 [1] : vector<32x512xf32> to vector<32xf32>
    %35 = vector.shape_cast %34 : vector<32xf32> to vector<32x1xf32>
    %cst_11 = arith.constant 9.99999996E-13 : f32
    %cst_12 = arith.constant 9.99999995E+11 : f32
    %36 = vector.broadcast %cst_11 : f32 to vector<32x1xf32>
    %37 = arith.maximumf %36, %35 : vector<32x1xf32>
    %38 = vector.broadcast %cst_12 : f32 to vector<32x1xf32>
    %39 = arith.minimumf %38, %37 : vector<32x1xf32>
    %cst_13 = arith.constant 0.000000e+00 : f32
    %40 = vector.broadcast %cst_13 : f32 to vector<32x1xf32>
    %41 = arith.select %27, %39, %40 : vector<32x1xi1>, vector<32x1xf32>
    %c0_14 = arith.constant 0 : index
    %c0_15 = arith.constant 0 : index
    %42 = memref.load %arg4[%c0_14, %c0_15] : memref<1x1xf32, #tpu.memory_space<smem>>
    %43 = vector.shape_cast %41 : vector<32x1xf32> to vector<1x32x1xf32>
    %cst_16 = arith.constant dense<0.000000e+00> : vector<1xf32>
    %44 = vector.multi_reduction <add>, %43, %cst_16 [1, 2] : vector<1x32x1xf32> to vector<1xf32>
    %45 = vector.shape_cast %44 : vector<1xf32> to vector<1x1x1xf32>
    %46 = vector.extract %45[0, 0, 0] : f32 from vector<1x1x1xf32>
    %47 = arith.addf %42, %46 : f32
    %c0_17 = arith.constant 0 : index
    %c0_18 = arith.constant 0 : index
    %48 = memref.load %arg4[%c0_17, %c0_18] : memref<1x1xf32, #tpu.memory_space<smem>>
    memref.store %47, %arg4[%c0_17, %c0_18] : memref<1x1xf32, #tpu.memory_space<smem>>
    %c0_i32_19 = arith.constant 0 : i32
    %49 = arith.cmpi eq, %arg0, %c0_i32_19 : i32
    %50 = arith.extui %49 : i1 to i32
    %c0_i32_20 = arith.constant 0 : i32
    %51 = arith.cmpi ne, %50, %c0_i32_20 : i32
    scf.if %51 {
      %c0_21 = arith.constant 0 : index
      %c0_22 = arith.constant 0 : index
      %52 = memref.load %arg4[%c0_21, %c0_22] : memref<1x1xf32, #tpu.memory_space<smem>>
      %cst_23 = arith.constant 3.200000e+01 : f32
      %53 = arith.divf %52, %cst_23 : f32
      %c0_24 = arith.constant 0 : index
      %c0_25 = arith.constant 0 : index
      %54 = memref.load %arg4[%c0_24, %c0_25] : memref<1x1xf32, #tpu.memory_space<smem>>
      memref.store %53, %arg4[%c0_24, %c0_25] : memref<1x1xf32, #tpu.memory_space<smem>>
    } else {
    }
    return
  }
  func.func @transform_0(%arg0: i32) -> (i32, i32) {
    %c0_i32 = arith.constant 0 : i32
    %c0_i32_0 = arith.constant 0 : i32
    return %arg0, %c0_i32 : i32, i32
  }
  func.func @transform_1(%arg0: i32) -> (i32, i32) {
    %c0_i32 = arith.constant 0 : i32
    %c0_i32_0 = arith.constant 0 : i32
    %c0_i32_1 = arith.constant 0 : i32
    return %c0_i32, %c0_i32_0 : i32, i32
  }
  func.func @transform_2(%arg0: i32) -> (i32, i32) {
    %c0_i32 = arith.constant 0 : i32
    %c0_i32_0 = arith.constant 0 : i32
    return %arg0, %c0_i32 : i32, i32
  }
  func.func @transform_3(%arg0: i32) -> (i32, i32) {
    %c0_i32 = arith.constant 0 : i32
    %c0_i32_0 = arith.constant 0 : i32
    %c0_i32_1 = arith.constant 0 : i32
    return %c0_i32, %c0_i32_0 : i32, i32
  }
}

</mosaic_0001>

<bundles_post_ra>
// kernel: tpu_custom_call.1
= control target key start
LH: loop header
LB: loop body
LE: loop exit
PB: predicated region body
PF: predicated region fallthrough
CT: control target
= control target key end

     0   :  { %8 = vsyncpa [#allocation3], 0  ;;  %s500_s0 = inlined_call_operand.hbm [shape: f32[32,512], index: 0, kind: input, shape index: {}]   ;;  %s501_s1 = inlined_call_operand.vmem [shape: f32[2,512], index: 1, kind: input, shape index: {}]   ;;  %s502_s2 = inlined_call_operand.vmem [shape: s32[32,1], index: 2, kind: input, shape index: {}]   ;;  %s503_s3 = inlined_call_operand.hbm [shape: f32[1,1], index: 3, kind: output, shape index: {}]  }
   0x1   :  { %9 = vsyncpa [#allocation4], 0  ;;  %s373_s12 = smov [#allocation2]   ;;  %s337_s16 = scalar_lea.hbm %s500_s0, 2048 }
   0x2   :  { %s15_s13 = sshll.u32 %s373_s12, 4  ;;  %p338_p0 = scmp.ne.s32.totalorder %s500_s0, %s337_s16  ;;  %s16_s13 = int_to_ptr.vmem [resolvable:$true] %s15_s13 }
   0x3   :  { %p341_p1 = scmp.lt.u32.totalorder %s337_s16, %s500_s0 }
   0x5   :  { %p343_p2 = pnand %p341_p1, %p338_p0 }
   0x7   :  { %346 = shalt.err (!%p343_p2)
}
   0x8   :  { %s347_s21 = scalar_lea.vmem %s16_s13, 2048  ;;  %p352_p4 = scmp.lt.s32.totalorder %s16_s13, %s16_s13 }
   0x9   :  { %p348_p3 = scmp.ne.s32.totalorder %s16_s13, %s347_s21  ;;  %p353_p5 = scmp.lt.s32.totalorder %s347_s21, %s347_s21 }
   0xb   :  { %p354_p6 = por %p353_p5, %p352_p4 }
   0xd   :  { %p355_p7 = pnand %p354_p6, %p348_p3 }
   0xf   :  { %358 = shalt.err (!%p355_p7)
}
  0x10   :  { %s374_s22 = smov 512   ;;  %s375_s23 = smov 32  }
  0x11   :  { %21 = dma.hbm_to_vmem [thread:$0]  %s500_s0, 2048, %s16_s13, [#allocation3], %s374_s22, %s374_s22, %s375_s23  }
  0x12   :  { %369 = dma.done.wait [#allocation3], 2048  }
  0x13   :  { %370 = vsyncadd [#allocation3], 4294965248  ;;  %v376_v0 = vmov 0   ;;  %v51_v1 = vld [vmem:[%s502_s2] sm:$0xff]  ;;  %v52_v2 = vld [vmem:[%s502_s2 + $0x8] sm:$0xff]  ;;  %v81_v13 = vlaneseq  ;;  %s359_s13 = scalar_lea.hbm %s503_s3, 16 }
  0x14   :  { %336 = vset.pattern.permute.xlu1 %v376_v0  ;;  %335 = vset.pattern.permute.xlu0 %v376_v0  ;;  %vm119_vm0 = vcmp.eq.s32.totalorder %v51_v1, 1  ;;  %vm56_vm1 = vcmp.eq.s32.totalorder %v51_v1, 0  ;;  %vm120_vm2 = vcmp.eq.s32.totalorder %v52_v2, 1  ;;  %vm57_vm3 = vcmp.eq.s32.totalorder %v52_v2, 0  ;;  %v53_v5 = vld [vmem:[%s502_s2 + $0x10] sm:$0xff]  ;;  %v54_v8 = vld [vmem:[%s502_s2 + $0x18] sm:$0xff]  ;;  %p360_p8 = scmp.ne.s32.totalorder %s503_s3, %s359_s13  ;;  %p363_p9 = scmp.lt.u32.totalorder %s359_s13, %s503_s3 }
  0x15   :  { %v123_v3 = vsel %vm119_vm0, 1, %v376_v0  ;;  %v60_v4 = vsel %vm56_vm1, 1, %v376_v0  ;;  %v124_v6 = vsel %vm120_vm2, 1, %v376_v0  ;;  %v61_v7 = vsel %vm57_vm3, 1, %v376_v0  ;;  %v35_v31 = vld [vmem:[#allocation2] sm:$0xff]  ;;  %v36_v32 = vld [vmem:[#allocation2 + $0x8] sm:$0xff] }
  0x16   :  { %128 = vperm.xlu1 %336, %v123_v3   ;;  %65 = vperm.xlu0 %335, %v60_v4   ;;  %vm121_vm4 = vcmp.eq.s32.totalorder %v53_v5, 1  ;;  %vm58_vm5 = vcmp.eq.s32.totalorder %v53_v5, 0  ;;  %vm122_vm6 = vcmp.eq.s32.totalorder %v54_v8, 1  ;;  %vm59_vm7 = vcmp.eq.s32.totalorder %v54_v8, 0  ;;  %v37_v37 = vld [vmem:[#allocation2 + $0x10] sm:$0xff]  ;;  %v38_v38 = vld [vmem:[#allocation2 + $0x18] sm:$0xff]  ;;  %p365_p10 = pnand %p363_p9, %p360_p8 }
  0x17   :  { %v125_v9 = vsel %vm121_vm4, 1, %v376_v0  ;;  %v62_v10 = vsel %vm58_vm5, 1, %v376_v0  ;;  %v126_v11 = vsel %vm122_vm6, 1, %v376_v0  ;;  %v63_v12 = vsel %vm59_vm7, 1, %v376_v0  ;;  %v39_v47 = vld [vmem:[#allocation2 + $0x20] sm:$0xff]  ;;  %v40_v48 = vld [vmem:[#allocation2 + $0x28] sm:$0xff] }
  0x18   :  { %v82_v14 = vshrl.u32 %v81_v13, 7  ;;  %v55_v19 = vld [vmem:[%s501_s1] ss:$2 sm:$0xf]  ;;  %v44_v1 = vld [vmem:[#allocation2 + $0x48] sm:$0xff]  ;;  %v41_v4 = vld [vmem:[#allocation2 + $0x30] sm:$0xff] }
  0x19   :  { %v326_v20 = vld [vmem:[%s501_s1 + $0x1] ss:$2 sm:$0xf]  ;;  %v42_v8 = vld [vmem:[#allocation2 + $0x38] sm:$0xff]  ;;  %vm284_vm0 = vcmask 7168  }
  0x1a   :  { %131 = vperm.xlu1 %336, %v124_v6   ;;  %68 = vperm.xlu0 %335, %v61_v7   ;;  %v83_v15 = vsub.s32 0, %v82_v14  ;;  %v87_v16 = vsub.s32 1, %v82_v14  ;;  %v91_v17 = vsub.s32 2, %v82_v14  ;;  %v95_v18 = vsub.s32 3, %v82_v14  ;;  %v43_v0 = vld [vmem:[#allocation2 + $0x40] sm:$0xff] }
  0x1c   :  { %v428_v21 = vrot.slane %v55_v19, %v83_v15  ;;  %v430_v22 = vrot.slane %v55_v19, %v87_v16  ;;  %v432_v23 = vrot.slane %v55_v19, %v91_v17  ;;  %v434_v24 = vrot.slane %v55_v19, %v95_v18 }
  0x1d   :  { %v436_v25 = vrot.slane %v326_v20, %v83_v15  ;;  %v438_v26 = vrot.slane %v326_v20, %v87_v16  ;;  %v440_v27 = vrot.slane %v326_v20, %v91_v17  ;;  %v442_v28 = vrot.slane %v326_v20, %v95_v18  ;;  %v47_v20 = vld [vmem:[#allocation2 + $0x60] sm:$0xff] }
  0x1e   :  { %134 = vperm.xlu1 %336, %v125_v9   ;;  %71 = vperm.xlu0 %335, %v62_v10  }
  0x22   :  { %137 = vperm.xlu1 %336, %v126_v11   ;;  %74 = vperm.xlu0 %335, %v63_v12  }
  0x95   :  { %v129_v29 = vpop.permute.xlu1 %128  ;;  %v66_v30 = vpop.permute.xlu0 %65 }
  0x96   :  { %vm139_vm8 = vcmp.eq.s32.totalorder %v129_v29, 1  ;;  %vm76_vm9 = vcmp.eq.s32.totalorder %v66_v30, 1  ;;  %v48_v29 = vld [vmem:[#allocation2 + $0x68] sm:$0xff] }
  0x97   :  { %v101_v33 = vsel %vm76_vm9, %v428_v21, 0.0  ;;  %v102_v34 = vsel %vm76_vm9, %v430_v22, 0.0  ;;  %v103_v35 = vsel %vm76_vm9, %v432_v23, 0.0  ;;  %v104_v36 = vsel %vm76_vm9, %v434_v24, 0.0 }
  0x98   :  { %v164_v39 = vsel %vm139_vm8, %v436_v25, %v101_v33  ;;  %v165_v40 = vsel %vm139_vm8, %v438_v26, %v102_v34  ;;  %v166_v41 = vsel %vm139_vm8, %v440_v27, %v103_v35  ;;  %v167_v42 = vsel %vm139_vm8, %v442_v28, %v104_v36  ;;  %v45_v36 = vld [vmem:[#allocation2 + $0x50] sm:$0xff] }
  0x99   :  { %v195_v43 = vsub.f32 %v35_v31, %v164_v39  ;;  %v196_v44 = vsub.f32 %v36_v32, %v165_v40  ;;  %v132_v45 = vpop.permute.xlu1 %131  ;;  %v69_v46 = vpop.permute.xlu0 %68  ;;  %v197_v49 = vsub.f32 %v37_v37, %v166_v41  ;;  %v198_v50 = vsub.f32 %v38_v38, %v167_v42  ;;  %v46_v41 = vld [vmem:[#allocation2 + $0x58] sm:$0xff] }
  0x9a   :  { %vm140_vm10 = vcmp.eq.s32.totalorder %v132_v45, 1  ;;  %vm77_vm11 = vcmp.eq.s32.totalorder %v69_v46, 1 }
  0x9b   :  { %v105_v51 = vsel %vm77_vm11, %v428_v21, 0.0  ;;  %v106_v52 = vsel %vm77_vm11, %v430_v22, 0.0  ;;  %v107_v53 = vsel %vm77_vm11, %v432_v23, 0.0  ;;  %v108_v54 = vsel %vm77_vm11, %v434_v24, 0.0 }
  0x9c   :  { %v168_v55 = vsel %vm140_vm10, %v436_v25, %v105_v51  ;;  %v169_v56 = vsel %vm140_vm10, %v438_v26, %v106_v52  ;;  %v235_v57 = vmul.f32 %v195_v43, %v195_v43  ;;  %v170_v58 = vsel %vm140_vm10, %v440_v27, %v107_v53 }
  0x9d   :  { %v199_v59 = vsub.f32 %v39_v47, %v168_v55  ;;  %v200_v60 = vsub.f32 %v40_v48, %v169_v56  ;;  %v135_v61 = vpop.permute.xlu1 %134  ;;  %v72_v62 = vpop.permute.xlu0 %71  ;;  %v236_v63 = vmul.f32 %v196_v44, %v196_v44  ;;  %v237_v2 = vmul.f32 %v197_v49, %v197_v49  ;;  %v49_v44 = vld [vmem:[#allocation2 + $0x70] sm:$0xff] }
  0x9e   :  { %vm141_vm12 = vcmp.eq.s32.totalorder %v135_v61, 1  ;;  %vm78_vm13 = vcmp.eq.s32.totalorder %v72_v62, 1  ;;  %v238_v3 = vmul.f32 %v198_v50, %v198_v50  ;;  %v171_v9 = vsel %vm140_vm10, %v442_v28, %v108_v54 }
  0x9f   :  { %v109_v5 = vsel %vm78_vm13, %v428_v21, 0.0  ;;  %v110_v6 = vsel %vm78_vm13, %v430_v22, 0.0  ;;  %v111_v7 = vsel %vm78_vm13, %v432_v23, 0.0  ;;  %v112_v10 = vsel %vm78_vm13, %v434_v24, 0.0 }
  0xa0   :  { %v172_v11 = vsel %vm141_vm12, %v436_v25, %v109_v5  ;;  %v173_v12 = vsel %vm141_vm12, %v438_v26, %v110_v6  ;;  %v251_v13 = vadd.f32 %v236_v63, %v235_v57  ;;  %v174_v14 = vsel %vm141_vm12, %v440_v27, %v111_v7 }
  0xa1   :  { %v203_v15 = vsub.f32 %v43_v0, %v172_v11  ;;  %v204_v16 = vsub.f32 %v44_v1, %v173_v12  ;;  %v138_v17 = vpop.permute.xlu1 %137  ;;  %v75_v18 = vpop.permute.xlu0 %74  ;;  %v201_v19 = vsub.f32 %v41_v4, %v170_v58  ;;  %v202_v31 = vsub.f32 %v42_v8, %v171_v9 }
  0xa2   :  { %vm142_vm14 = vcmp.eq.s32.totalorder %v138_v17, 1  ;;  %vm79_vm15 = vcmp.eq.s32.totalorder %v75_v18, 1  ;;  %v252_v30 = vadd.f32 %v251_v13, %v237_v2  ;;  %v239_v35 = vmul.f32 %v199_v59, %v199_v59 }
  0xa3   :  { %v113_v32 = vsel %vm79_vm15, %v428_v21, 0.0  ;;  %v114_v33 = vsel %vm79_vm15, %v430_v22, 0.0  ;;  %v115_v34 = vsel %vm79_vm15, %v432_v23, 0.0  ;;  %v116_v37 = vsel %vm79_vm15, %v434_v24, 0.0 }
  0xa4   :  { %v176_v38 = vsel %vm142_vm14, %v436_v25, %v113_v32  ;;  %v177_v39 = vsel %vm142_vm14, %v438_v26, %v114_v33  ;;  %v253_v40 = vadd.f32 %v252_v30, %v238_v3  ;;  %v178_v42 = vsel %vm142_vm14, %v440_v27, %v115_v34  ;;  %v50_v25 = vld [vmem:[#allocation2 + $0x78] sm:$0xff] }
  0xa5   :  { %v207_v21 = vsub.f32 %v47_v20, %v176_v38  ;;  %v208_v43 = vsub.f32 %v48_v29, %v177_v39  ;;  %v240_v22 = vmul.f32 %v200_v60, %v200_v60  ;;  %v241_v23 = vmul.f32 %v201_v19, %v201_v19 }
  0xa6   :  { %254 = vadd.xlane.f32.xlu0 %v253_v40  ;;  %v175_v24 = vsel %vm141_vm12, %v442_v28, %v112_v10  ;;  %v205_v45 = vsub.f32 %v45_v36, %v174_v14  ;;  %v243_v46 = vmul.f32 %v203_v15, %v203_v15  ;;  %v244_v26 = vmul.f32 %v204_v16, %v204_v16 }
  0xa7   :  { %v256_v47 = vadd.f32 %v240_v22, %v239_v35  ;;  %v206_v48 = vsub.f32 %v46_v41, %v175_v24  ;;  %v179_v49 = vsel %vm142_vm14, %v442_v28, %v116_v37  ;;  %v242_v50 = vmul.f32 %v202_v31, %v202_v31 }
  0xa8   :  { %v245_v27 = vmul.f32 %v205_v45, %v205_v45  ;;  %v209_v51 = vsub.f32 %v49_v44, %v178_v42  ;;  %v247_v52 = vmul.f32 %v207_v21, %v207_v21  ;;  %v261_v54 = vadd.f32 %v244_v26, %v243_v46 }
  0xa9   :  { %v257_v53 = vadd.f32 %v256_v47, %v241_v23  ;;  %v210_v55 = vsub.f32 %v50_v25, %v179_v49  ;;  %v248_v56 = vmul.f32 %v208_v43, %v208_v43  ;;  %v246_v57 = vmul.f32 %v206_v48, %v206_v48 }
  0xaa   :  { %v262_v59 = vadd.f32 %v261_v54, %v245_v27  ;;  %v249_v60 = vmul.f32 %v209_v51, %v209_v51 }
  0xab   :  { %v258_v58 = vadd.f32 %v257_v53, %v242_v50  ;;  %v266_v61 = vadd.f32 %v248_v56, %v247_v52  ;;  %v250_v63 = vmul.f32 %v210_v55, %v210_v55 }
  0xac   :  { %v263_v62 = vadd.f32 %v262_v59, %v246_v57 }
  0xad   :  { %259 = vadd.xlane.f32.xlu1 %v258_v58  ;;  %v267_v0 = vadd.f32 %v266_v61, %v249_v60 }
  0xae   :  { %264 = vadd.xlane.f32.xlu0 %v263_v62 }
  0xaf   :  { %v268_v1 = vadd.f32 %v267_v0, %v250_v63 }
  0xb2   :  { %269 = vadd.xlane.f32.xlu0 %v268_v1 }
 0x133   :  { %v255_v28 = vpop.xlane.xlu0 %254 }
 0x134   :  { %v271_v2 = vmax.f32 %v255_v28, 1e-12 }
 0x136   :  { %v275_v6 = vmin.f32 %v271_v2, 1e+12 }
 0x138   :  { %v285_v12 = vsel %vm284_vm0, %v275_v6, 0.0 }
 0x13a   :  { %v260_v3 = vpop.xlane.xlu1 %259 }
 0x13b   :  { %v272_v4 = vmax.f32 %v260_v3, 1e-12  ;;  %v265_v5 = vpop.xlane.xlu0 %264 }
 0x13c   :  { %v273_v8 = vmax.f32 %v265_v5, 1e-12 }
 0x13d   :  { %v276_v7 = vmin.f32 %v272_v4, 1e+12 }
 0x13e   :  { %v277_v10 = vmin.f32 %v273_v8, 1e+12 }
 0x13f   :  { %v286_v9 = vsel %vm284_vm0, %v276_v7, 0.0  ;;  %v270_v11 = vpop.xlane.xlu0 %269 }
 0x140   :  { %v288_v13 = vsel %vm284_vm0, %v277_v10, 0.0  ;;  %v274_v14 = vmax.f32 %v270_v11, 1e-12  ;;  %v287_v15 = vadd.f32 %v286_v9, %v285_v12 }
 0x142   :  { %v278_v16 = vmin.f32 %v274_v14, 1e+12  ;;  %v289_v17 = vadd.f32 %v288_v13, %v287_v15 }
 0x144   :  { %v290_v18 = vsel %vm284_vm0, %v278_v16, 0.0 }
 0x145   :  { %v291_v19 = vadd.f32 %v290_v18, %v289_v17 }
 0x147   :  { %292 = vadd.xlane.f32.xlu1 %v291_v19 }
 0x1d4   :  { %v293_v20 = vpop.xlane.xlu1 %292 }
 0x1d5   :  { %v294_v29 = vrot.slane %v293_v20, 4 }
 0x1d7   :  { %v295_v30 = vadd.f32 %v294_v29, %v293_v20 }
 0x1d9   :  { %v296_v31 = vrot.slane %v295_v30, 2 }
 0x1db   :  { %v297_v32 = vadd.f32 %v296_v31, %v295_v30 }
 0x1dd   :  { %v298_v33 = vrot.slane %v297_v32, 1 }
 0x1df   :  { %v299_v34 = vadd.f32 %v298_v33, %v297_v32 }
 0x1e1   :  { %327 = vpush %v299_v34 }
 0x212   :  { %s328_s1 = spop %327 }
 0x213   :  { %s301_s9 = sadd.f32 3.2e-11, %s328_s1 }
 0x215   :  { %s310_s10 = smul.f32 0.03125, %s301_s9 }
 0x217   :  { %311 = sst [smem:[#allocation5]] %s310_s10 }
 0x218   :  { %368 = shalt.err (!%p365_p10)
}
 0x219   :  { %s377_s18 = smov [#allocation5]  }
 0x21a   :  { %319 = dma.smem_to_hbm %s377_s18, 16, %s503_s3, [#allocation4]  }
 0x21b   :  { %371 = dma.done.wait [#allocation4], 16  }
 0x21c   :  { %372 = vsyncadd [#allocation4], 4294967280 }
 0x21d   :  { %323 = sfence }
 0x21e   :  { %324 = vsyncpa [#allocation3], 1 }
 0x21f   :  { %325 = vsyncpa [#allocation4], 1 }

</bundles_post_ra>
